<compile_context>
chip_gen: v7x
topology: tpu7x:2x2x1
jax: 0.10.0
libtpu: 0.0.40
codegen_flags: <defaults>
</compile_context>

<pallas_src>
from collections import defaultdict

import numpy as np
import jax
import jax.numpy as jnp
from jax.experimental import pallas as pl
from jax.experimental.pallas import tpu as pltpu

_VMEM_LIMIT = 48 * 1024 * 1024  # > v5e 16MiB / v6e-v7x 32MiB scoped default, < v7x 64MiB phys


def _round_up(x: int, m: int) -> int:
    return ((x + m - 1) // m) * m


# ---------------------------------------------------------------------------
# Kernel 1: silence-frame keep mask (argmax reduction over the feature dim),
#           batched over utterances and tiled over T.
# ---------------------------------------------------------------------------
def _make_silence_mask_kernel(silence_frame: int):
    def kernel(feat_ref, mask_ref):
        f = feat_ref[...].astype(jnp.float32)                  # (tile_t, D)
        tt, D = f.shape
        row_max = jnp.max(f, axis=1, keepdims=True)            # (tile_t, 1)
        col_idx = jax.lax.broadcasted_iota(jnp.int32, (tt, D), 1)
        # first index attaining the row max (matches torch/jnp argmax tie-break)
        argmax = jnp.min(jnp.where(f == row_max, col_idx, D), axis=1, keepdims=True)
        mask_ref[...] = (argmax != silence_frame).astype(jnp.int32)   # (tile_t, 1)
    return kernel


def batched_silence_keep_masks(feats_np, silence_frame: int, tile_t: int = 512):
    """One batched pallas_call + one host sync for all utterances in the batch.

    Returns a list of boolean numpy masks, one per utterance (length T_i each).
    """
    N = len(feats_np)
    D = int(feats_np[0].shape[1])
    T_max = max(int(f.shape[0]) for f in feats_np)
    tile_t = max(128, min(tile_t, _round_up(max(T_max, 1), 128)))
    T_pad = max(tile_t, _round_up(T_max, tile_t))
    num_tiles = T_pad // tile_t

    batch = np.zeros((N, T_pad, D), np.float32)
    for i, f in enumerate(feats_np):
        batch[i, : f.shape[0]] = np.asarray(f, np.float32)

    kernel = _make_silence_mask_kernel(int(silence_frame))
    masks = pl.pallas_call(
        kernel,
        out_shape=jax.ShapeDtypeStruct((N, num_tiles, tile_t, 1), jnp.int32),
        grid=(N, num_tiles),
        in_specs=[pl.BlockSpec((None, tile_t, D), lambda n, t: (n, t, 0))],
        out_specs=pl.BlockSpec((None, None, tile_t, 1), lambda n, t: (n, t, 0, 0)),
        compiler_params=pltpu.CompilerParams(
            dimension_semantics=("parallel", "parallel"),
            vmem_limit_bytes=_VMEM_LIMIT),
    )(jnp.asarray(batch))

    masks = np.asarray(jax.block_until_ready(masks)).reshape(N, T_pad)  # single sync
    return [masks[i, : feats_np[i].shape[0]].astype(bool) for i in range(N)]


# ---------------------------------------------------------------------------
# Kernel 2a: one-shot doc preparation (hoisted out of the per-(query,doc) hot path):
#            L2-normalize rows in f32, cast to bf16; wrapper pre-transposes to (D, Td_pad).
# ---------------------------------------------------------------------------
def _l2norm_bf16_kernel(d_ref, out_ref):
    d = d_ref[...].astype(jnp.float32)                          # (td_tile, D)
    inv = jax.lax.rsqrt(jnp.maximum(jnp.sum(d * d, axis=1, keepdims=True), 1e-12))
    out_ref[...] = (d * inv).astype(jnp.bfloat16)


def prepare_doc(doc, *, td_tile: int = 512):
    """Normalize + bf16-cast + pad + transpose a doc once; reuse across all queries."""
    doc = jnp.asarray(doc, jnp.float32)
    Td, D = doc.shape
    td_tile = max(128, min(td_tile, _round_up(max(Td, 1), 128)))
    Td_pad = max(td_tile, _round_up(Td, td_tile))
    if Td_pad != Td:
        doc = jnp.pad(doc, ((0, Td_pad - Td), (0, 0)))

    doc_n = pl.pallas_call(
        _l2norm_bf16_kernel,
        out_shape=jax.ShapeDtypeStruct((Td_pad, D), jnp.bfloat16),
        grid=(Td_pad // td_tile,),
        in_specs=[pl.BlockSpec((td_tile, D), lambda i: (i, 0))],
        out_specs=pl.BlockSpec((td_tile, D), lambda i: (i, 0)),
        compiler_params=pltpu.CompilerParams(
            dimension_semantics=("parallel",),
            vmem_limit_bytes=_VMEM_LIMIT),
    )(doc)

    # One-time wrapper-side transpose so the hot kernel feeds the MXU a standard (k, n)
    # RHS and never re-transposes the resident doc tile. Td_pad % 128 == 0 -> lane-dense.
    doc_nT = jnp.swapaxes(doc_n, 0, 1)                           # (D, Td_pad) bf16
    return doc_nT, int(Td)


# ---------------------------------------------------------------------------
# Kernel 2b: cosine_exp / cosine_neg_log distance matrix (the match() hot path),
#            tiled over queries.
# ---------------------------------------------------------------------------
def _make_dist_kernel(dist_method: str, minmax_norm: bool, td_valid: int):
    def kernel(q_ref, dT_ref, out_ref):
        q = q_ref[...].astype(jnp.float32)                       # (tq, D)
        inv = jax.lax.rsqrt(jnp.maximum(jnp.sum(q * q, axis=1, keepdims=True), 1e-12))
        qn = (q * inv).astype(jnp.bfloat16)                      # bf16 MXU feed
        sim = jnp.dot(qn, dT_ref[...], preferred_element_type=jnp.float32)  # (tq, Td_pad)
        if dist_method == "cosine_exp":
            # exp(1 - sim) - 1 == scipy cosine_exp; bf16-induced sim error (~1e-3)
            # dominates any exp-vs-expm1 difference; exp has a guaranteed EUP lowering.
            dist = jnp.exp(1.0 - sim) - 1.0
        elif dist_method == "cosine_neg_log":
            # -log(1 - cosine_dist) == -log(cos_sim); clamp keeps padded/degenerate
            # rows (sim <= 0) finite instead of NaN/inf.
            dist = -jnp.log(jnp.maximum(sim, 1e-9))
        else:
            raise ValueError(f"unsupported dist_method {dist_method}")
        if minmax_norm:
            tq_, tdp = dist.shape
            if td_valid < tdp:  # mask padded doc columns out of the per-row min/max
                col = jax.lax.broadcasted_iota(jnp.int32, (tq_, tdp), 1)
                valid = col < td_valid
                dmin = jnp.min(jnp.where(valid, dist, jnp.inf), axis=1, keepdims=True)
                dmax = jnp.max(jnp.where(valid, dist, -jnp.inf), axis=1, keepdims=True)
            else:
                dmin = jnp.min(dist, axis=1, keepdims=True)
                dmax = jnp.max(dist, axis=1, keepdims=True)
            # EUP reciprocal on the (tq, 1) column + VALU multiply on the full tile,
            # instead of a full-tile divide.
            inv_rng = pl.reciprocal(jnp.maximum(dmax - dmin, 1e-9), approx=True)
            dist = (dist - dmin) * inv_rng
        out_ref[...] = dist
    return kernel


def cosine_dist_matrix(query, doc=None, *, doc_prepared=None, dist_method: str = "cosine_exp",
                       minmax_norm: bool = True, tq: int = 256):
    """dist[i,j] for cosine_exp / cosine_neg_log, with optional per-row minmax norm."""
    if doc_prepared is None:
        assert doc is not None
        doc_prepared = prepare_doc(doc)
    doc_nT, td_valid = doc_prepared                               # (D, Td_pad) bf16, int
    D_doc, Td_pad = doc_nT.shape

    q = jnp.asarray(query, jnp.float32)
    Tq, D = q.shape
    assert D == D_doc
    tq = max(8, min(tq, _round_up(max(Tq, 1), 8)))
    Tq_pad = max(tq, _round_up(Tq, tq))
    if Tq_pad != Tq:
        q = jnp.pad(q, ((0, Tq_pad - Tq), (0, 0)))

    kernel = _make_dist_kernel(str(dist_method), bool(minmax_norm), int(td_valid))
    out = pl.pallas_call(
        kernel,
        out_shape=jax.ShapeDtypeStruct((Tq_pad, Td_pad), jnp.float32),
        grid=(Tq_pad // tq,),
        in_specs=[pl.BlockSpec((tq, D), lambda i: (i, 0)),           # query tile
                  pl.BlockSpec((D_doc, Td_pad), lambda i: (0, 0))],  # resident doc (reused)
        out_specs=pl.BlockSpec((tq, Td_pad), lambda i: (i, 0)),      # lane-dense output
        compiler_params=pltpu.CompilerParams(
            dimension_semantics=("parallel",),
            vmem_limit_bytes=_VMEM_LIMIT),
    )(q, doc_nT)
    return out[:Tq, :td_valid]


# Backwards-compatible alias used in earlier revisions.
def cosine_exp_dist(query, doc=None, *, doc_prepared=None, minmax_norm: bool = True, tq: int = 256):
    return cosine_dist_matrix(query, doc=doc, doc_prepared=doc_prepared,
                              dist_method="cosine_exp", minmax_norm=minmax_norm, tq=tq)


# ---------------------------------------------------------------------------
# DownstreamExpert (forward pass; DTW scoring / XML report left as TODO)
# ---------------------------------------------------------------------------
class DownstreamExpertPallas:
    def __init__(self, upstream_dim: int, downstream_expert: dict, expdir: str = ".", **kwargs):
        self.upstream_dim = upstream_dim
        self.max_workers = downstream_expert.get("max_workers", 1)
        self.feature_normalization = downstream_expert["feature_normalization"]
        self.silence_frame = downstream_expert["silence_frame"]
        self.datarc = downstream_expert.get("datarc", {})
        self.dtwrc = downstream_expert["dtwrc"]
        assert not (self.feature_normalization
                    and self.dtwrc["dist_method"] == "cosine_neg_log")
        assert self.dtwrc["step_pattern"] == "asymmetric" or not self.dtwrc["subsequence"]

    def forward(self, mode, features, audio_names, records, **kwargs):
        feats = [np.asarray(f) for f in features]
        if self.silence_frame is None or len(feats) == 0:
            for f, name in zip(feats, audio_names):
                records["features"].append(f)
                records["audio_names"].append(name)
            return
        # One batched kernel launch + one host sync for the whole batch.
        keeps = batched_silence_keep_masks(feats, int(self.silence_frame))
        for f, name, keep in zip(feats, audio_names, keeps):
            # data-dependent output shape -> host-side row compaction (glue), mirroring
            # `feature[feature.argmax(1) != silence_frame]`.
            records["features"].append(f[keep])
            records["audio_names"].append(name)


# ---------------------------------------------------------------------------
if __name__ == "__main__":
    key = jax.random.PRNGKey(0)
    D = 32
    lengths = [16, 24]
    ks = jax.random.split(key, len(lengths))
    features = [jax.random.normal(ks[i], (lengths[i], D), jnp.float32)
                for i in range(len(lengths))]
    audio_names = ["query_0", "doc_0"]

    expert = DownstreamExpertPallas(
        upstream_dim=D,
        downstream_expert={
            "max_workers": 1,
            "feature_normalization": False,
            "silence_frame": 0,
            "datarc": {},
            "dtwrc": {"dist_method": "cosine_exp", "step_pattern": "asymmetric",
                      "subsequence": True, "minmax_norm": True},
        },
        expdir=".",
    )

    records = defaultdict(list)
    expert.forward("dev", features, audio_names, records)

    # ---- reference check: forward pass (silence-frame filtering) ----
    for orig, filt in zip(features, records["features"]):
        o = np.asarray(orig)
        ref = o[o.argmax(1) != 0]
        assert ref.shape == filt.shape and np.allclose(ref, filt), "forward mismatch"

    # ---- match() hot path: cosine_exp distance matrix with minmax norm ----
    q = np.asarray(records["features"][0])
    d = np.asarray(records["features"][1])
    doc_prep = prepare_doc(jnp.asarray(d))                    # hoisted / cached per doc
    dist = jax.block_until_ready(
        cosine_dist_matrix(jnp.asarray(q), doc_prepared=doc_prep,
                           dist_method="cosine_exp", minmax_norm=True))
    dist = np.asarray(dist)

    # float64 numpy reference (scipy cosine_exp + per-row minmax norm)
    qn = q.astype(np.float64); dn = d.astype(np.float64)
    qn = qn / np.linalg.norm(qn, axis=1, keepdims=True)
    dn = dn / np.linalg.norm(dn, axis=1, keepdims=True)
    ref = np.exp(1.0 - qn @ dn.T) - 1.0
    rmin = ref.min(1, keepdims=True); rmax = ref.max(1, keepdims=True)
    ref = (ref - rmin) / np.clip(rmax - rmin, 1e-9, np.inf)

    assert dist.shape == ref.shape, "distance shape mismatch"
    err = np.max(np.abs(dist - ref))
    assert err < 3e-2, f"distance mismatch (max abs err {err})"   # bf16 MXU tolerance

    print("KERNEL_OK")
</pallas_src>

<mosaic_0001>
module attributes {stable_mosaic.version = 11 : i64} {
  func.func @kernel(%arg0: i32, %arg1: i32, %arg2: memref<1x128x32xf32, #tpu.memory_space<vmem>>, %arg3: memref<1x1x128x1xi32, #tpu.memory_space<vmem>>) attributes {dimension_semantics = [#tpu.dimension_semantics<parallel>, #tpu.dimension_semantics<parallel>], iteration_bounds = array<i64: 2, 1>, scalar_prefetch = 0 : i64, scratch_operands = 0 : i64, tpu.core_type = #tpu.core_type<tc>, window_params = [{transform_indices = @transform_0, window_bounds = array<i64: 1, 128, 32>}, {transform_indices = @transform_1, window_bounds = array<i64: 1, 1, 128, 1>}]} {
    %c0 = arith.constant 0 : index
    %c0_0 = arith.constant 0 : index
    %c0_1 = arith.constant 0 : index
    %0 = vector.load %arg2[%c0, %c0_0, %c0_1] : memref<1x128x32xf32, #tpu.memory_space<vmem>>, vector<1x128x32xf32>
    %1 = vector.shape_cast %0 : vector<1x128x32xf32> to vector<128x32xf32>
    %cst = arith.constant dense<0xFF800000> : vector<128xf32>
    %2 = vector.multi_reduction <maximumf>, %1, %cst [1] : vector<128x32xf32> to vector<128xf32>
    %3 = vector.shape_cast %2 : vector<128xf32> to vector<128x1xf32>
    %4 = tpu.iota {dimensions = array<i32: 1>} : vector<128x32xi32>
    %5 = vector.broadcast %3 : vector<128x1xf32> to vector<128x32xf32>
    %6 = arith.cmpf oeq, %1, %5 : vector<128x32xf32>
    %c32_i32 = arith.constant 32 : i32
    %7 = vector.broadcast %c32_i32 : i32 to vector<128x32xi32>
    %8 = arith.select %6, %4, %7 : vector<128x32xi1>, vector<128x32xi32>
    %cst_2 = arith.constant dense<2147483647> : vector<128xi32>
    %9 = vector.multi_reduction <minsi>, %8, %cst_2 [1] : vector<128x32xi32> to vector<128xi32>
    %10 = vector.shape_cast %9 : vector<128xi32> to vector<128x1xi32>
    %c0_i32 = arith.constant 0 : i32
    %11 = vector.broadcast %c0_i32 : i32 to vector<128x1xi32>
    %12 = arith.cmpi ne, %10, %11 : vector<128x1xi32>
    %13 = arith.extui %12 : vector<128x1xi1> to vector<128x1xi32>
    %c0_3 = arith.constant 0 : index
    %c0_4 = arith.constant 0 : index
    %c0_5 = arith.constant 0 : index
    %c0_6 = arith.constant 0 : index
    %14 = vector.load %arg3[%c0_3, %c0_4, %c0_5, %c0_6] : memref<1x1x128x1xi32, #tpu.memory_space<vmem>>, vector<1x1x128x1xi32>
    %15 = vector.shape_cast %14 : vector<1x1x128x1xi32> to vector<128x1xi32>
    %16 = vector.shape_cast %13 : vector<128x1xi32> to vector<1x1x128x1xi32>
    tpu.vector_store %arg3[%c0_3, %c0_4, %c0_5, %c0_6], %16 {strides = array<i32>} : memref<1x1x128x1xi32, #tpu.memory_space<vmem>>, vector<1x1x128x1xi32>,
    return
  }
  func.func @transform_0(%arg0: i32, %arg1: i32) -> (i32, i32, i32) {
    %c0_i32 = arith.constant 0 : i32
    %c0_i32_0 = arith.constant 0 : i32
    return %arg0, %arg1, %c0_i32 : i32, i32, i32
  }
  func.func @transform_1(%arg0: i32, %arg1: i32) -> (i32, i32, i32, i32) {
    %c0_i32 = arith.constant 0 : i32
    %c0_i32_0 = arith.constant 0 : i32
    %c0_i32_1 = arith.constant 0 : i32
    return %arg0, %arg1, %c0_i32, %c0_i32_0 : i32, i32, i32, i32
  }
}

</mosaic_0001>

<bundles_post_ra>
// kernel: tpu_custom_call.1
= control target key start
LH: loop header
LB: loop body
LE: loop exit
PB: predicated region body
PF: predicated region fallthrough
CT: control target
= control target key end

     0   :  { %s705_s6 = smov 0   ;;  %s707_s7 = smov 0   ;;  %s1107_s0 = inlined_call_operand.vmem [shape: f32[2,128,32], index: 0, kind: input, shape index: {}]   ;;  %s1108_s1 = inlined_call_operand.vmem [shape: s32[2,1,128,1], index: 1, kind: output, shape index: {}]  }
   0x1   :  { %s709_s8 = smov 0  }
   0x2 LB: > { %s23_s9 = sadd.s32 1, %s688_s7  ;;  %p636_p0 = scmp.ge.s32.totalorder %s692_s8, 1  ;;  %s692_s8 = sphi %s709_s8, %s11_s8   ;;  %s688_s7 = sphi %s707_s7, %s1110_s7   ;;  %s684_s6 = sphi %s705_s6, %s1109_s6  }
   0x3   : > { %p25_p1 = scmp.ge.s32.totalorder %s23_s9, 2  ;;  %p108_p2 = scmp.lt.s32.totalorder %s692_s8, 3 }
   0x5   : > { %s1112_s9 = smov (%p25_p1, %s23_s9), 0  ;;  %p109_p3 = pnand %p636_p0, %p108_p2 }
   0x6   : > { %p137_p4 = scmp.lt.s32.totalorder (!%p109_p3), %s684_s6, 1  ;;  %vm171_vm0 = vcmask (!%p109_p3), 261120   ;;  %v220_v32 = vlaneseq (!%p109_p3) }
   0x7   : > { %112 = sbr.rel (%p109_p3) target bundleno = 493 (0x1ed), region = 24 }
   0x8   : > { %v804_v33 = vand.u32 (!%p109_p3), 127, %v220_v32 }
   0xe   : > { %s1114_s6 = smov (!%p137_p4, %s684_s6), 1 }
   0xf   : > { %s643_s10 = sshll.u32 %s1114_s6, 7 }
  0x10   : > { %s731_s13 = scalar_lea.vmem %s1107_s0, %s643_s10  ;;  %s1035_s16 = scalar_lea.vmem %s1108_s1, %s643_s10 }
  0x11   : > { %v155_v0 = vld [vmem:[%s731_s13] sm:$0xff]  ;;  %v157_v1 = vld [vmem:[%s731_s13 + $0x10] sm:$0xff]  ;;  %v736_v2 = vld [vmem:[%s731_s13 + $0x8] sm:$0xff] }
  0x12   : > { %v172_v3 = vsel %vm171_vm0, %v155_v0, -inf  ;;  %v178_v4 = vsel %vm171_vm0, %v157_v1, -inf  ;;  %v158_v5 = vld [vmem:[%s731_s13 + $0x18] sm:$0xff]  ;;  %v175_v6 = vsel %vm171_vm0, %v736_v2, -inf  ;;  %v745_v8 = vld [vmem:[%s731_s13 + $0x20] sm:$0xff]  ;;  %v748_v9 = vld [vmem:[%s731_s13 + $0x28] sm:$0xff] }
  0x13   : > { %173 = vmax.xlane.f32.xlu0 %v172_v3  ;;  %179 = vmax.xlane.f32.xlu1 %v178_v4  ;;  %v181_v7 = vsel %vm171_vm0, %v158_v5, -inf  ;;  %v184_v10 = vsel %vm171_vm0, %v745_v8, -inf  ;;  %v187_v11 = vsel %vm171_vm0, %v748_v9, -inf  ;;  %v755_v12 = vld [vmem:[%s731_s13 + $0x30] sm:$0xff]  ;;  %v758_v13 = vld [vmem:[%s731_s13 + $0x38] sm:$0xff]  ;;  %v765_v16 = vld [vmem:[%s731_s13 + $0x40] sm:$0xff] }
  0x14   : > { %v190_v14 = vsel %vm171_vm0, %v755_v12, -inf  ;;  %v193_v15 = vsel %vm171_vm0, %v758_v13, -inf  ;;  %v768_v17 = vld [vmem:[%s731_s13 + $0x48] sm:$0xff]  ;;  %v196_v18 = vsel %vm171_vm0, %v765_v16, -inf  ;;  %v775_v20 = vld [vmem:[%s731_s13 + $0x50] sm:$0xff]  ;;  %v778_v21 = vld [vmem:[%s731_s13 + $0x58] sm:$0xff] }
  0x15   : > { %v199_v19 = vsel %vm171_vm0, %v768_v17, -inf  ;;  %v202_v22 = vsel %vm171_vm0, %v775_v20, -inf  ;;  %v205_v23 = vsel %vm171_vm0, %v778_v21, -inf  ;;  %v785_v24 = vld [vmem:[%s731_s13 + $0x60] sm:$0xff]  ;;  %v788_v25 = vld [vmem:[%s731_s13 + $0x68] sm:$0xff]  ;;  %v795_v28 = vld [vmem:[%s731_s13 + $0x70] sm:$0xff] }
  0x16   : > { %v208_v26 = vsel %vm171_vm0, %v785_v24, -inf  ;;  %v211_v27 = vsel %vm171_vm0, %v788_v25, -inf  ;;  %v798_v29 = vld [vmem:[%s731_s13 + $0x78] sm:$0xff]  ;;  %v214_v30 = vsel %vm171_vm0, %v795_v28, -inf }
  0x17   : > { %176 = vmax.xlane.f32.xlu0 %v175_v6  ;;  %182 = vmax.xlane.f32.xlu1 %v181_v7  ;;  %v217_v31 = vsel %vm171_vm0, %v798_v29, -inf }
  0x1b   : > { %185 = vmax.xlane.f32.xlu0 %v184_v10  ;;  %188 = vmax.xlane.f32.xlu1 %v187_v11 }
  0x1f   : > { %191 = vmax.xlane.f32.xlu0 %v190_v14  ;;  %194 = vmax.xlane.f32.xlu1 %v193_v15 }
  0x23   : > { %197 = vmax.xlane.f32.xlu0 %v196_v18  ;;  %200 = vmax.xlane.f32.xlu1 %v199_v19 }
  0x27   : > { %203 = vmax.xlane.f32.xlu0 %v202_v22  ;;  %206 = vmax.xlane.f32.xlu1 %v205_v23 }
  0x2b   : > { %209 = vmax.xlane.f32.xlu0 %v208_v26  ;;  %212 = vmax.xlane.f32.xlu1 %v211_v27 }
  0x2f   : > { %215 = vmax.xlane.f32.xlu0 %v214_v30  ;;  %218 = vmax.xlane.f32.xlu1 %v217_v31 }
  0xa0   : > { %v174_v34 = vpop.xlane.xlu0 %173  ;;  %v180_v35 = vpop.xlane.xlu1 %179 }
  0xa1   : > { %vm222_vm1 = vcmp.eq.f32.partialorder %v155_v0, %v174_v34  ;;  %vm224_vm2 = vcmp.eq.f32.partialorder %v157_v1, %v180_v35 }
  0xa2   : > { %v238_v36 = vsel %vm222_vm1, %v804_v33, 32  ;;  %v240_v37 = vsel %vm224_vm2, %v804_v33, 32 }
  0xa3   : > { %v809_v38 = vsel %vm171_vm0, %v238_v36, 2147483647  ;;  %v812_v39 = vsel %vm171_vm0, %v240_v37, 2147483647 }
  0xa4   : > { %v177_v40 = vpop.xlane.xlu0 %176  ;;  %v183_v41 = vpop.xlane.xlu1 %182  ;;  %v256_v42 = vshra.s32 %v809_v38, 16  ;;  %v286_v43 = vshra.s32 %v812_v39, 16 }
  0xa5   : > { %vm223_vm3 = vcmp.eq.f32.partialorder %v736_v2, %v177_v40  ;;  %vm225_vm4 = vcmp.eq.f32.partialorder %v158_v5, %v183_v41 }
  0xa6   : > { %v239_v44 = vsel %vm223_vm3, %v804_v33, 32  ;;  %v241_v45 = vsel %vm225_vm4, %v804_v33, 32  ;;  %v819_v46 = vcvt.s32.f32 %v256_v42  ;;  %v828_v51 = vcvt.s32.f32 %v286_v43 }
  0xa7   : > { %v822_v47 = vsel %vm171_vm0, %v239_v44, 2147483647  ;;  %v825_v48 = vsel %vm171_vm0, %v241_v45, 2147483647 }
  0xa8   : > { %259 = vmin.xlane.f32.xlu0 %v819_v46  ;;  %v186_v49 = vpop.xlane.xlu0 %185  ;;  %v189_v50 = vpop.xlane.xlu1 %188  ;;  %v271_v52 = vshra.s32 %v822_v47, 16  ;;  %v301_v53 = vshra.s32 %v825_v48, 16 }
  0xa9   : > { %vm226_vm5 = vcmp.eq.f32.partialorder %v745_v8, %v186_v49  ;;  %vm227_vm6 = vcmp.eq.f32.partialorder %v748_v9, %v189_v50 }
  0xaa   : > { %v242_v54 = vsel %vm226_vm5, %v804_v33, 32  ;;  %v243_v55 = vsel %vm227_vm6, %v804_v33, 32  ;;  %v836_v56 = vcvt.s32.f32 %v271_v52  ;;  %v846_v61 = vcvt.s32.f32 %v301_v53 }
  0xab   : > { %v839_v57 = vsel %vm171_vm0, %v242_v54, 2147483647  ;;  %v842_v58 = vsel %vm171_vm0, %v243_v55, 2147483647 }
  0xac   : > { %289 = vmin.xlane.f32.xlu0 %v828_v51  ;;  %274 = vmin.xlane.f32.xlu1 %v836_v56  ;;  %v192_v59 = vpop.xlane.xlu0 %191  ;;  %v195_v60 = vpop.xlane.xlu1 %194  ;;  %v316_v62 = vshra.s32 %v839_v57, 16  ;;  %v331_v63 = vshra.s32 %v842_v58, 16 }
  0xad   : > { %vm228_vm7 = vcmp.eq.f32.partialorder %v755_v12, %v192_v59  ;;  %vm229_vm8 = vcmp.eq.f32.partialorder %v758_v13, %v195_v60  ;;  %v255_v59 = vand.u32 65535, %v809_v38  ;;  %v300_v38 = vand.u32 65535, %v825_v48 }
  0xae   : > { %v244_v0 = vsel %vm228_vm7, %v804_v33, 32  ;;  %v245_v1 = vsel %vm229_vm8, %v804_v33, 32  ;;  %v854_v2 = vcvt.s32.f32 %v316_v62  ;;  %v864_v7 = vcvt.s32.f32 %v331_v63 }
  0xaf   : > { %v857_v3 = vsel %vm171_vm0, %v244_v0, 2147483647  ;;  %v860_v4 = vsel %vm171_vm0, %v245_v1, 2147483647  ;;  %v257_v62 = vcvt.s32.f32 %v255_v59  ;;  %v270_v63 = vand.u32 65535, %v822_v47 }
  0xb0   : > { %304 = vmin.xlane.f32.xlu1 %v846_v61  ;;  %319 = vmin.xlane.f32.xlu0 %v854_v2  ;;  %v198_v5 = vpop.xlane.xlu0 %197  ;;  %v201_v6 = vpop.xlane.xlu1 %200  ;;  %v346_v8 = vshra.s32 %v857_v3, 16  ;;  %v361_v9 = vshra.s32 %v860_v4, 16  ;;  %v285_v0 = vand.u32 65535, %v812_v39  ;;  %v330_v48 = vand.u32 65535, %v842_v58 }
  0xb1   : > { %vm230_vm9 = vcmp.eq.f32.partialorder %v765_v16, %v198_v5  ;;  %vm231_vm10 = vcmp.eq.f32.partialorder %v768_v17, %v201_v6  ;;  %v360_v58 = vand.u32 65535, %v860_v4 }
  0xb2   : > { %v246_v10 = vsel %vm230_vm9, %v804_v33, 32  ;;  %v247_v11 = vsel %vm231_vm10, %v804_v33, 32  ;;  %v872_v12 = vcvt.s32.f32 %v346_v8  ;;  %v882_v18 = vcvt.s32.f32 %v361_v9 }
  0xb3   : > { %v875_v13 = vsel %vm171_vm0, %v246_v10, 2147483647  ;;  %v878_v14 = vsel %vm171_vm0, %v247_v11, 2147483647  ;;  %v272_v8 = vcvt.s32.f32 %v270_v63  ;;  %v287_v9 = vcvt.s32.f32 %v285_v0 }
  0xb4   : > { %334 = vmin.xlane.f32.xlu1 %v864_v7  ;;  %349 = vmin.xlane.f32.xlu0 %v872_v12  ;;  %v204_v15 = vpop.xlane.xlu0 %203  ;;  %v207_v16 = vpop.xlane.xlu1 %206  ;;  %v376_v17 = vshra.s32 %v875_v13, 16  ;;  %v391_v19 = vshra.s32 %v878_v14, 16  ;;  %v315_v10 = vand.u32 65535, %v839_v57  ;;  %v345_v57 = vand.u32 65535, %v857_v3 }
  0xb5   : > { %vm232_vm11 = vcmp.eq.f32.partialorder %v775_v20, %v204_v15  ;;  %vm233_vm12 = vcmp.eq.f32.partialorder %v778_v21, %v207_v16  ;;  %v302_v15 = vcvt.s32.f32 %v300_v38  ;;  %v375_v3 = vand.u32 65535, %v875_v13 }
  0xb6   : > { %v248_v22 = vsel %vm232_vm11, %v804_v33, 32  ;;  %v249_v23 = vsel %vm233_vm12, %v804_v33, 32  ;;  %v890_v26 = vcvt.s32.f32 %v376_v17  ;;  %v900_v32 = vcvt.s32.f32 %v391_v19 }
  0xb7   : > { %v893_v27 = vsel %vm171_vm0, %v248_v22, 2147483647  ;;  %v896_v30 = vsel %vm171_vm0, %v249_v23, 2147483647  ;;  %v317_v16 = vcvt.s32.f32 %v315_v10  ;;  %v332_v22 = vcvt.s32.f32 %v330_v48 }
  0xb8   : > { %364 = vmin.xlane.f32.xlu1 %v882_v18  ;;  %379 = vmin.xlane.f32.xlu0 %v890_v26  ;;  %v210_v31 = vpop.xlane.xlu0 %209  ;;  %v213_v20 = vpop.xlane.xlu1 %212  ;;  %v406_v21 = vshra.s32 %v893_v27, 16  ;;  %v421_v34 = vshra.s32 %v896_v30, 16  ;;  %v347_v23 = vcvt.s32.f32 %v345_v57  ;;  %v390_v4 = vand.u32 65535, %v878_v14 }
  0xb9   : > { %vm234_vm13 = vcmp.eq.f32.partialorder %v785_v24, %v210_v31  ;;  %vm235_vm14 = vcmp.eq.f32.partialorder %v788_v25, %v213_v20  ;;  %v405_v13 = vand.u32 65535, %v893_v27  ;;  %v420_v14 = vand.u32 65535, %v896_v30 }
  0xba   : > { %v250_v35 = vsel %vm234_vm13, %v804_v33, 32  ;;  %v251_v36 = vsel %vm235_vm14, %v804_v33, 32  ;;  %v908_v37 = vcvt.s32.f32 %v406_v21  ;;  %v918_v43 = vcvt.s32.f32 %v421_v34 }
  0xbb   : > { %v911_v40 = vsel %vm171_vm0, %v250_v35, 2147483647  ;;  %v914_v41 = vsel %vm171_vm0, %v251_v36, 2147483647  ;;  %v362_v21 = vcvt.s32.f32 %v360_v58  ;;  %v377_v34 = vcvt.s32.f32 %v375_v3 }
  0xbc   : > { %394 = vmin.xlane.f32.xlu1 %v900_v32  ;;  %409 = vmin.xlane.f32.xlu0 %v908_v37  ;;  %v216_v42 = vpop.xlane.xlu0 %215  ;;  %v219_v24 = vpop.xlane.xlu1 %218  ;;  %v436_v25 = vshra.s32 %v911_v40, 16  ;;  %v451_v44 = vshra.s32 %v914_v41, 16  ;;  %v435_v27 = vand.u32 65535, %v911_v40  ;;  %v450_v30 = vand.u32 65535, %v914_v41 }
  0xbd   : > { %vm236_vm15 = vcmp.eq.f32.partialorder %v795_v28, %v216_v42  ;;  %vm237_vm1 = vcmp.eq.f32.partialorder %v798_v29, %v219_v24  ;;  %v392_v42 = vcvt.s32.f32 %v390_v4  ;;  %v407_v24 = vcvt.s32.f32 %v405_v13 }
  0xbe   : > { %v252_v45 = vsel %vm236_vm15, %v804_v33, 32  ;;  %v253_v49 = vsel %vm237_vm1, %v804_v33, 32  ;;  %v926_v50 = vcvt.s32.f32 %v436_v25  ;;  %v936_v54 = vcvt.s32.f32 %v451_v44 }
  0xbf   : > { %v929_v52 = vsel %vm171_vm0, %v252_v45, 2147483647  ;;  %v932_v53 = vsel %vm171_vm0, %v253_v49, 2147483647  ;;  %v422_v45 = vcvt.s32.f32 %v420_v14  ;;  %v437_v49 = vcvt.s32.f32 %v435_v27 }
  0xc0   : > { %424 = vmin.xlane.f32.xlu1 %v918_v43  ;;  %439 = vmin.xlane.f32.xlu0 %v926_v50  ;;  %v466_v28 = vshra.s32 %v929_v52, 16  ;;  %v481_v29 = vshra.s32 %v932_v53, 16  ;;  %v465_v40 = vand.u32 65535, %v929_v52  ;;  %v452_v59 = vcvt.s32.f32 %v450_v30 }
  0xc1   : > { %v480_v41 = vand.u32 65535, %v932_v53 }
  0xc2   : > { %v940_v55 = vcvt.s32.f32 %v466_v28  ;;  %v944_v33 = vcvt.s32.f32 %v481_v29 }
  0xc3   : > { %v482_v63 = vcvt.s32.f32 %v480_v41 }
  0xc4   : > { %454 = vmin.xlane.f32.xlu1 %v936_v54  ;;  %469 = vmin.xlane.f32.xlu0 %v940_v55 }
  0xc8   : > { %484 = vmin.xlane.f32.xlu1 %v944_v33 }
 0x135   : > { %v948_v60 = vpop.xlane.xlu0 %259 }
 0x136   : > { %vm261_vm0 = vcmp.eq.f32.partialorder %v819_v46, %v948_v60  ;;  %v266_v53 = vcvt.f32.s32 %v948_v60 }
 0x137   : > { %v262_v1 = vsel %vm261_vm0, %v257_v62, inf  ;;  %v467_v62 = vcvt.s32.f32 %v465_v40  ;;  %vm526_vm0 = vcmask 7168  }
 0x138   : > { %263 = vmin.xlane.f32.xlu0 %v262_v1 }
 0x139   : > { %v954_v5 = vpop.xlane.xlu1 %274  ;;  %v956_v6 = vpop.xlane.xlu0 %289 }
 0x13a   : > { %vm276_vm2 = vcmp.eq.f32.partialorder %v836_v56, %v954_v5  ;;  %vm291_vm3 = vcmp.eq.f32.partialorder %v828_v51, %v956_v6 }
 0x13b   : > { %v277_v39 = vsel %vm276_vm2, %v272_v8, inf  ;;  %v292_v46 = vsel %vm291_vm3, %v287_v9, inf  ;;  %v267_v8 = vshll.u32 %v266_v53, 16 }
 0x13c   : > { %278 = vmin.xlane.f32.xlu1 %v277_v39  ;;  %293 = vmin.xlane.f32.xlu0 %v292_v46 }
 0x13d   : > { %v964_v47 = vpop.xlane.xlu1 %304  ;;  %v966_v11 = vpop.xlane.xlu0 %319 }
 0x13e   : > { %vm306_vm4 = vcmp.eq.f32.partialorder %v846_v61, %v964_v47  ;;  %vm321_vm5 = vcmp.eq.f32.partialorder %v854_v2, %v966_v11  ;;  %v311_v10 = vcvt.f32.s32 %v964_v47  ;;  %v326_v60 = vcvt.f32.s32 %v966_v11 }
 0x13f   : > { %v307_v51 = vsel %vm306_vm4, %v302_v15, inf  ;;  %v322_v56 = vsel %vm321_vm5, %v317_v16, inf  ;;  %v694_v16 = vmov 0  }
 0x140   : > { %308 = vmin.xlane.f32.xlu1 %v307_v51  ;;  %323 = vmin.xlane.f32.xlu0 %v322_v56  ;;  %v312_v56 = vshll.u32 %v311_v10, 16  ;;  %v327_v47 = vshll.u32 %v326_v60, 16 }
 0x141   : > { %v974_v17 = vpop.xlane.xlu1 %334  ;;  %v976_v19 = vpop.xlane.xlu0 %349 }
 0x142   : > { %vm336_vm6 = vcmp.eq.f32.partialorder %v864_v7, %v974_v17  ;;  %vm351_vm7 = vcmp.eq.f32.partialorder %v872_v12, %v976_v19  ;;  %v341_v11 = vcvt.f32.s32 %v974_v17 }
 0x143   : > { %v337_v61 = vsel %vm336_vm6, %v332_v22, inf  ;;  %v352_v2 = vsel %vm351_vm7, %v347_v23, inf  ;;  %v356_v22 = vcvt.f32.s32 %v976_v19 }
 0x144   : > { %338 = vmin.xlane.f32.xlu1 %v337_v61  ;;  %353 = vmin.xlane.f32.xlu0 %v352_v2  ;;  %v342_v4 = vshll.u32 %v341_v11, 16 }
 0x145   : > { %v984_v31 = vpop.xlane.xlu1 %364  ;;  %v986_v20 = vpop.xlane.xlu0 %379  ;;  %v357_v19 = vshll.u32 %v356_v22, 16 }
 0x146   : > { %vm366_vm8 = vcmp.eq.f32.partialorder %v882_v18, %v984_v31  ;;  %vm381_vm9 = vcmp.eq.f32.partialorder %v890_v26, %v986_v20  ;;  %v371_v13 = vcvt.f32.s32 %v984_v31 }
 0x147   : > { %v367_v7 = vsel %vm366_vm8, %v362_v21, inf  ;;  %v382_v12 = vsel %vm381_vm9, %v377_v34, inf }
 0x148   : > { %368 = vmin.xlane.f32.xlu1 %v367_v7  ;;  %383 = vmin.xlane.f32.xlu0 %v382_v12  ;;  %v386_v7 = vcvt.f32.s32 %v986_v20 }
 0x149   : > { %v994_v35 = vpop.xlane.xlu1 %394  ;;  %v996_v36 = vpop.xlane.xlu0 %409 }
 0x14a   : > { %vm396_vm10 = vcmp.eq.f32.partialorder %v900_v32, %v994_v35  ;;  %vm411_vm11 = vcmp.eq.f32.partialorder %v908_v37, %v996_v36  ;;  %v387_v20 = vshll.u32 %v386_v7, 16  ;;  %v416_v30 = vcvt.f32.s32 %v996_v36 }
 0x14b   : > { %v397_v18 = vsel %vm396_vm10, %v392_v42, inf  ;;  %v412_v26 = vsel %vm411_vm11, %v407_v24, inf }
 0x14c   : > { %398 = vmin.xlane.f32.xlu1 %v397_v18  ;;  %413 = vmin.xlane.f32.xlu0 %v412_v26  ;;  %v417_v36 = vshll.u32 %v416_v30, 16 }
 0x14d   : > { %v1004_v25 = vpop.xlane.xlu1 %424  ;;  %v1006_v44 = vpop.xlane.xlu0 %439 }
 0x14e   : > { %vm426_vm12 = vcmp.eq.f32.partialorder %v918_v43, %v1004_v25  ;;  %vm441_vm13 = vcmp.eq.f32.partialorder %v926_v50, %v1006_v44 }
 0x14f   : > { %v427_v32 = vsel %vm426_vm12, %v422_v45, inf  ;;  %v442_v37 = vsel %vm441_vm13, %v437_v49, inf  ;;  %v372_v45 = vshll.u32 %v371_v13, 16  ;;  %v401_v49 = vcvt.f32.s32 %v994_v35 }
 0x150   : > { %428 = vmin.xlane.f32.xlu1 %v427_v32  ;;  %443 = vmin.xlane.f32.xlu0 %v442_v37 }
 0x151   : > { %v1014_v28 = vpop.xlane.xlu1 %454  ;;  %v1016_v29 = vpop.xlane.xlu0 %469 }
 0x152   : > { %vm456_vm14 = vcmp.eq.f32.partialorder %v936_v54, %v1014_v28  ;;  %vm471_vm15 = vcmp.eq.f32.partialorder %v940_v55, %v1016_v29  ;;  %v281_v54 = vcvt.f32.s32 %v954_v5  ;;  %v296_v55 = vcvt.f32.s32 %v956_v6 }
 0x153   : > { %v457_v43 = vsel %vm456_vm14, %v452_v59, inf  ;;  %v472_v50 = vsel %vm471_vm15, %v467_v62, inf  ;;  %v461_v10 = vcvt.f32.s32 %v1014_v28  ;;  %v476_v60 = vcvt.f32.s32 %v1016_v29 }
 0x154   : > { %458 = vmin.xlane.f32.xlu1 %v457_v43  ;;  %473 = vmin.xlane.f32.xlu0 %v472_v50  ;;  %v297_v46 = vshll.u32 %v296_v55, 16  ;;  %v402_v50 = vshll.u32 %v401_v49, 16 }
 0x155   : > { %v1023_v52 = vpop.xlane.xlu1 %484  ;;  %v477_v29 = vshll.u32 %v476_v60, 16 }
 0x156   : > { %vm486_vm1 = vcmp.eq.f32.partialorder %v944_v33, %v1023_v52  ;;  %v282_v33 = vshll.u32 %v281_v54, 16 }
 0x157   : > { %v487_v0 = vsel %vm486_vm1, %v482_v63, inf  ;;  %v431_v63 = vcvt.f32.s32 %v1004_v25 }
 0x158   : > { %488 = vmin.xlane.f32.xlu1 %v487_v0  ;;  %v446_v0 = vcvt.f32.s32 %v1006_v44 }
 0x15a   : > { %v447_v44 = vshll.u32 %v446_v0, 16 }
 0x1c5   : > { %v264_v1 = vpop.xlane.xlu0 %263 }
 0x1c6   : > { %v265_v9 = vcvt.f32.s32 %v264_v1 }
 0x1c8   : > { %v268_v38 = vadd.s32 %v267_v8, %v265_v9 }
 0x1c9   : > { %v279_v5 = vpop.xlane.xlu1 %278  ;;  %v294_v39 = vpop.xlane.xlu0 %293 }
 0x1ca   : > { %vm494_vm2 = vcmp.ne.s32.totalorder %v268_v38, 0  ;;  %v280_v6 = vcvt.f32.s32 %v279_v5  ;;  %v295_v15 = vcvt.f32.s32 %v294_v39 }
 0x1cb   : > { %v510_v48 = vsel %vm494_vm2, 1, %v694_v16 }
 0x1cc   : > { %527 = vst.msk [vmem:[%s1035_s16] sm:$0xff] %vm526_vm0, %v510_v48  ;;  %v283_v57 = vadd.s32 %v282_v33, %v280_v6  ;;  %v298_v51 = vadd.s32 %v297_v46, %v295_v15  ;;  %v432_v33 = vshll.u32 %v431_v63, 16 }
 0x1cd   : > { %v309_v23 = vpop.xlane.xlu1 %308  ;;  %v324_v58 = vpop.xlane.xlu0 %323 }
 0x1ce   : > { %vm495_vm3 = vcmp.ne.s32.totalorder %v283_v57, 0  ;;  %vm496_vm4 = vcmp.ne.s32.totalorder %v298_v51, 0  ;;  %v310_v3 = vcvt.f32.s32 %v309_v23  ;;  %v325_v61 = vcvt.f32.s32 %v324_v58 }
 0x1cf   : > { %v511_v2 = vsel %vm495_vm3, 1, %v694_v16  ;;  %v512_v21 = vsel %vm496_vm4, 1, %v694_v16  ;;  %v462_v51 = vshll.u32 %v461_v10, 16 }
 0x1d0   : > { %528 = vst.msk [vmem:[%s1035_s16 + $0x8] sm:$0xff] %vm526_vm0, %v511_v2  ;;  %529 = vst.msk [vmem:[%s1035_s16 + $0x10] sm:$0xff] %vm526_vm0, %v512_v21  ;;  %v313_v34 = vadd.s32 %v312_v56, %v310_v3  ;;  %v328_v17 = vadd.s32 %v327_v47, %v325_v61  ;;  %v491_v56 = vcvt.f32.s32 %v1023_v52 }
 0x1d1   : > { %v339_v12 = vpop.xlane.xlu1 %338  ;;  %v354_v42 = vpop.xlane.xlu0 %353 }
 0x1d2   : > { %vm497_vm5 = vcmp.ne.s32.totalorder %v313_v34, 0  ;;  %vm498_vm6 = vcmp.ne.s32.totalorder %v328_v17, 0  ;;  %v340_v24 = vcvt.f32.s32 %v339_v12  ;;  %v355_v14 = vcvt.f32.s32 %v354_v42 }
 0x1d3   : > { %v513_v27 = vsel %vm497_vm5, 1, %v694_v16  ;;  %v514_v18 = vsel %vm498_vm6, 1, %v694_v16  ;;  %v492_v21 = vshll.u32 %v491_v56, 16 }
 0x1d4   : > { %530 = vst.msk [vmem:[%s1035_s16 + $0x18] sm:$0xff] %vm526_vm0, %v513_v27  ;;  %531 = vst.msk [vmem:[%s1035_s16 + $0x20] sm:$0xff] %vm526_vm0, %v514_v18  ;;  %v343_v26 = vadd.s32 %v342_v4, %v340_v24  ;;  %v358_v31 = vadd.s32 %v357_v19, %v355_v14 }
 0x1d5   : > { %v369_v40 = vpop.xlane.xlu1 %368  ;;  %v384_v32 = vpop.xlane.xlu0 %383 }
 0x1d6   : > { %vm499_vm7 = vcmp.ne.s32.totalorder %v343_v26, 0  ;;  %vm500_vm8 = vcmp.ne.s32.totalorder %v358_v31, 0  ;;  %v370_v37 = vcvt.f32.s32 %v369_v40  ;;  %v385_v59 = vcvt.f32.s32 %v384_v32 }
 0x1d7   : > { %v515_v62 = vsel %vm499_vm7, 1, %v694_v16  ;;  %v516_v41 = vsel %vm500_vm8, 1, %v694_v16 }
 0x1d8   : > { %532 = vst.msk [vmem:[%s1035_s16 + $0x28] sm:$0xff] %vm526_vm0, %v515_v62  ;;  %533 = vst.msk [vmem:[%s1035_s16 + $0x30] sm:$0xff] %vm526_vm0, %v516_v41  ;;  %v373_v43 = vadd.s32 %v372_v45, %v370_v37  ;;  %v388_v35 = vadd.s32 %v387_v20, %v385_v59 }
 0x1d9   : > { %v399_v53 = vpop.xlane.xlu1 %398  ;;  %v414_v54 = vpop.xlane.xlu0 %413 }
 0x1da   : > { %vm501_vm9 = vcmp.ne.s32.totalorder %v373_v43, 0  ;;  %vm502_vm10 = vcmp.ne.s32.totalorder %v388_v35, 0  ;;  %v400_v1 = vcvt.f32.s32 %v399_v53  ;;  %v415_v8 = vcvt.f32.s32 %v414_v54 }
 0x1db   : > { %v517_v55 = vsel %vm501_vm9, 1, %v694_v16  ;;  %v518_v9 = vsel %vm502_vm10, 1, %v694_v16 }
 0x1dc   : > { %534 = vst.msk [vmem:[%s1035_s16 + $0x38] sm:$0xff] %vm526_vm0, %v517_v55  ;;  %535 = vst.msk [vmem:[%s1035_s16 + $0x40] sm:$0xff] %vm526_vm0, %v518_v9  ;;  %v403_v38 = vadd.s32 %v402_v50, %v400_v1  ;;  %v418_v25 = vadd.s32 %v417_v36, %v415_v8 }
 0x1dd   : > { %v429_v5 = vpop.xlane.xlu1 %428  ;;  %v444_v39 = vpop.xlane.xlu0 %443 }
 0x1de   : > { %vm503_vm11 = vcmp.ne.s32.totalorder %v403_v38, 0  ;;  %vm504_vm12 = vcmp.ne.s32.totalorder %v418_v25, 0  ;;  %v430_v46 = vcvt.f32.s32 %v429_v5  ;;  %v445_v6 = vcvt.f32.s32 %v444_v39 }
 0x1df   : > { %v519_v15 = vsel %vm503_vm11, 1, %v694_v16  ;;  %v520_v48 = vsel %vm504_vm12, 1, %v694_v16 }
 0x1e0   : > { %536 = vst.msk [vmem:[%s1035_s16 + $0x48] sm:$0xff] %vm526_vm0, %v519_v15  ;;  %537 = vst.msk [vmem:[%s1035_s16 + $0x50] sm:$0xff] %vm526_vm0, %v520_v48  ;;  %v433_v57 = vadd.s32 %v432_v33, %v430_v46  ;;  %v448_v28 = vadd.s32 %v447_v44, %v445_v6 }
 0x1e1   : > { %v459_v47 = vpop.xlane.xlu1 %458  ;;  %v474_v11 = vpop.xlane.xlu0 %473 }
 0x1e2   : > { %vm505_vm13 = vcmp.ne.s32.totalorder %v433_v57, 0  ;;  %vm506_vm14 = vcmp.ne.s32.totalorder %v448_v28, 0  ;;  %v460_v22 = vcvt.f32.s32 %v459_v47  ;;  %v475_v23 = vcvt.f32.s32 %v474_v11 }
 0x1e3   : > { %v521_v58 = vsel %vm505_vm13, 1, %v694_v16  ;;  %v522_v3 = vsel %vm506_vm14, 1, %v694_v16 }
 0x1e4   : > { %538 = vst.msk [vmem:[%s1035_s16 + $0x58] sm:$0xff] %vm526_vm0, %v521_v58  ;;  %539 = vst.msk [vmem:[%s1035_s16 + $0x60] sm:$0xff] %vm526_vm0, %v522_v3  ;;  %v463_v61 = vadd.s32 %v462_v51, %v460_v22  ;;  %v478_v2 = vadd.s32 %v477_v29, %v475_v23 }
 0x1e5   : > { %v489_v52 = vpop.xlane.xlu1 %488 }
 0x1e6   : > { %vm507_vm15 = vcmp.ne.s32.totalorder %v463_v61, 0  ;;  %vm508_vm1 = vcmp.ne.s32.totalorder %v478_v2, 0  ;;  %v490_v34 = vcvt.f32.s32 %v489_v52 }
 0x1e7   : > { %v523_v17 = vsel %vm507_vm15, 1, %v694_v16  ;;  %v524_v4 = vsel %vm508_vm1, 1, %v694_v16 }
 0x1e8   : > { %540 = vst.msk [vmem:[%s1035_s16 + $0x68] sm:$0xff] %vm526_vm0, %v523_v17  ;;  %541 = vst.msk [vmem:[%s1035_s16 + $0x70] sm:$0xff] %vm526_vm0, %v524_v4  ;;  %v493_v19 = vadd.s32 %v492_v21, %v490_v34 }
 0x1ea   : > { %vm509_vm2 = vcmp.ne.s32.totalorder %v493_v19, 0 }
 0x1eb   : > { %v525_v13 = vsel %vm509_vm2, 1, %v694_v16 }
 0x1ec   : > { %542 = vst.msk [vmem:[%s1035_s16 + $0x78] sm:$0xff] %vm526_vm0, %v525_v13 }
 0x1ed PF: > { %s11_s8 = sadd.s32 1, %s692_s8   ;;  %s1109_s6 = smov %s688_s7 }
 0x1ee   : > { %p8_p5 = scmp.ge.s32.totalorder %s11_s8, 4   ;;  %s1110_s7 = smov %s1112_s9 }
 0x1f0   :  { %10 = sbr.rel (!%p8_p5) target bundleno = 2 (0x2), region = 54 }

</bundles_post_ra>
